<compile_context>
chip_gen: v6e
topology: v6e:2x2x1
jax: 0.10.0
libtpu: 0.0.40
codegen_flags: <defaults>
</compile_context>

<pallas_src>
import functools
import math

import jax
import jax.numpy as jnp
from jax import lax
from jax.experimental import pallas as pl
from jax.experimental.pallas import tpu as pltpu

EPS = 1e-5  # BatchNorm eps


# ----------------------------- Pallas kernel -------------------------------

def _sep_shift(x, wmt_ref, wmv_ref, offsets, V):
    """Separable per-channel fractional (T, V) shift on a (C, T*V) tile.

    wmt_ref / wmv_ref: (K, C, L) per-channel tent weights with the zero-pad
    validity masks (and, for shift_out, the bn2 scale) already folded in, so
    each term is a single roll + multiply.
    """
    L = x.shape[-1]
    # V pass: s = sum_dv wmv[dv] * roll_V(x, dv)
    s = None
    for iv, dv in enumerate(offsets):
        rolled = x if dv == 0 else pltpu.roll(x, shift=(-dv) % L, axis=x.ndim - 1)
        term = wmv_ref[iv] * rolled
        s = term if s is None else s + term
    # T pass: out = sum_dt wmt[dt] * roll_T(s, dt)
    out = None
    for it, dt in enumerate(offsets):
        rolled = s if dt == 0 else pltpu.roll(s, shift=(-dt * V) % L, axis=s.ndim - 1)
        term = wmt_ref[it] * rolled
        out = term if out is None else out + term
    return out


def shift_tcn_kernel(x_ref, a1_ref, b1_ref, wmt_in_ref, wmv_in_ref,
                     w_ref, cb_ref, wmt_out_ref, wmv_out_ref, b2_ref,
                     o_ref, *, offsets, V):
    nb = x_ref.shape[0]
    w = w_ref[...]                                   # (Cout, Cin)
    a1 = a1_ref[...]                                 # (Cin, 1)
    b1 = b1_ref[...]
    cb = cb_ref[...]                                 # (Cout, 1)
    b2 = b2_ref[...]

    # Small trace-time-unrolled loop over samples in this block (nb <= 8);
    # additional batch is handled by the grid.  All ops below are rank-2.
    for i in range(nb):
        x = x_ref[i]                                 # (Cin, L) f32, lane-dense

        # bn (BatchNorm2d, inference, folded): per-channel scale/bias.
        y = x * a1 + b1

        # shift_in: per-channel bilinear (T, V) shift (masks pre-folded).
        y = _sep_shift(y, wmt_in_ref, wmv_in_ref, offsets, V)

        # temporal_linear: 1x1 conv as one MXU matmul (exact f32 passes).
        y2 = jnp.dot(w, y, preferred_element_type=jnp.float32,
                     precision=lax.Precision.HIGHEST)        # (Cout, L)
        y2 = jnp.maximum(y2 + cb, 0.0)                       # + bias, ReLU

        # shift_out (bn2 scale folded into wmt_out), then bn2 bias.
        y2 = _sep_shift(y2, wmt_out_ref, wmv_out_ref, offsets, V)
        o_ref[i] = (y2 + b2).astype(o_ref.dtype)


def shift_tcn_forward(x_nchw, kp, offsets, *, block_batch=None):
    N, C, T, V = x_nchw.shape
    Cout = kp["w"].shape[0]
    L = T * V
    # NCHW -> (N, C, T*V): free reshape (contiguous fold), no HBM transpose.
    x2 = x_nchw.reshape(N, C, L).astype(jnp.float32)

    # Samples per grid step.  At the test size the whole batch fits in one
    # step (grid = (1,)), eliminating per-step launch/DMA-setup overhead.
    # Cap the per-step sample count (trace-unroll + VMEM); for large N the
    # grid covers the rest.  Re-derive the cap for v7x (64 MiB VMEM / TC).
    if block_batch is None:
        block_batch = min(N, 8)
    nb = max(1, min(block_batch, N))
    while N % nb:
        nb -= 1

    param_order = ["a1", "b1", "wmt_in", "wmv_in", "w", "cb",
                   "wmt_out", "wmv_out", "b2"]
    params = [kp[k] for k in param_order]

    def full_spec(shape):
        nd = len(shape)
        return pl.BlockSpec(shape, lambda n, _nd=nd: (0,) * _nd)

    kern = functools.partial(shift_tcn_kernel, offsets=offsets, V=V)
    out = pl.pallas_call(
        kern,
        out_shape=jax.ShapeDtypeStruct((N, Cout, L), jnp.float32),
        grid=(N // nb,),
        in_specs=[pl.BlockSpec((nb, C, L), lambda n: (n, 0, 0))]
                 + [full_spec(q.shape) for q in params],
        out_specs=pl.BlockSpec((nb, Cout, L), lambda n: (n, 0, 0)),
        compiler_params=pltpu.CompilerParams(
            # Blocks are independent across batch tiles.  On v7x, switch to
            # pltpu.CORE_PARALLEL (or pl.core_map) only when per-core work is
            # at least a few microseconds; at this size one fused step wins.
            dimension_semantics=("parallel",)),
    )(x2, *params)
    return out.reshape(N, Cout, T, V)             # free reshape back to NCHW

    # TODO(synk): once batched enough to be HBM-bound, move activation I/O to
    # bf16 (compute stays f32 in-kernel).


# -------------------------- parameter construction -------------------------

def _tent(pos, offsets):
    """Per-channel bilinear 'tent' interpolation weights, shape (C, K)."""
    d = jnp.asarray(offsets, jnp.float32)[None, :]
    return jnp.maximum(0.0, 1.0 - jnp.abs(d - pos[:, None]))


def _pad_masks(offsets, T, V):
    """Zero-padding validity masks over the flattened (T*V,) lane axis.

    Returns (mask_t, mask_v), each (K, L) f32, for integer shifts along T / V.
    """
    L = T * V
    lane = jnp.arange(L, dtype=jnp.int32)
    t_idx = lane // V
    v_idx = lane % V
    mt, mv = [], []
    for d in offsets:
        if d == 0:
            vt = jnp.ones((L,), bool)
            vv = jnp.ones((L,), bool)
        elif d > 0:
            vt = t_idx < T - d
            vv = v_idx < V - d
        else:
            vt = t_idx >= -d
            vv = v_idx >= -d
        mt.append(vt)
        mv.append(vv)
    return (jnp.stack(mt).astype(jnp.float32),
            jnp.stack(mv).astype(jnp.float32))


def _weight_masks(ypos, xpos, offsets, T, V, t_scale=None):
    """(K, C, L) weights = tent weight x zero-pad mask (optionally x t_scale).

    t_scale (per-channel) is folded into the T-axis weights; used to absorb
    the bn2 scale into shift_out (exact: the shift is per-channel linear).
    """
    mt, mv = _pad_masks(offsets, T, V)                  # (K, L)
    wt = _tent(ypos, offsets).T                         # (K, C)
    wv = _tent(xpos, offsets).T                         # (K, C)
    if t_scale is not None:
        wt = wt * t_scale[None, :]
    wmt = wt[:, :, None] * mt[:, None, :]               # (K, C, L)
    wmv = wv[:, :, None] * mv[:, None, :]
    return wmt, wmv


def init_params(key, in_channels, out_channels, init_scale, offsets, T, V):
    ks = jax.random.split(key, 10)
    # bn = BatchNorm2d(in_channels) -- inference mode, deterministic stats.
    g1 = 1.0 + 0.1 * jax.random.normal(ks[0], (in_channels,), jnp.float32)
    be1 = 0.1 * jax.random.normal(ks[1], (in_channels,), jnp.float32)
    rm1 = 0.1 * jax.random.normal(ks[2], (in_channels,), jnp.float32)
    rv1 = jax.random.uniform(ks[3], (in_channels,), jnp.float32, 0.5, 1.5)
    # bn2: bn_init(bn2, 1) -> gamma=1, beta=0; default running stats.
    g2 = jnp.ones((out_channels,), jnp.float32)
    be2 = jnp.zeros((out_channels,), jnp.float32)
    rm2 = jnp.zeros((out_channels,), jnp.float32)
    rv2 = jnp.ones((out_channels,), jnp.float32)
    # Shift modules: per-channel fractional positions (Shift-GCN init).
    ypos_in = jax.random.uniform(ks[4], (in_channels,), jnp.float32,
                                 -init_scale, init_scale)             # T axis
    xpos_in = jax.random.uniform(ks[5], (in_channels,), jnp.float32,
                                 -1e-8, 1e-8)                         # V axis
    ypos_out = jax.random.uniform(ks[6], (out_channels,), jnp.float32,
                                  -init_scale, init_scale)
    xpos_out = jax.random.uniform(ks[7], (out_channels,), jnp.float32,
                                  -1e-8, 1e-8)
    # temporal_linear: Conv2d(in, out, 1), kaiming_normal(fan_out) + bias.
    std = math.sqrt(2.0 / out_channels)
    w_oi = std * jax.random.normal(ks[8], (out_channels, in_channels), jnp.float32)
    bound = 1.0 / math.sqrt(in_channels)
    cb = jax.random.uniform(ks[9], (out_channels,), jnp.float32, -bound, bound)

    raw = dict(g1=g1, be1=be1, rm1=rm1, rv1=rv1,
               g2=g2, be2=be2, rm2=rm2, rv2=rv2,
               ypos_in=ypos_in, xpos_in=xpos_in,
               ypos_out=ypos_out, xpos_out=xpos_out,
               w_oi=w_oi, cb=cb)

    # Fold BN (inference) into per-channel scale/bias.
    a1 = g1 / jnp.sqrt(rv1 + EPS)
    b1 = be1 - rm1 * a1
    a2 = g2 / jnp.sqrt(rv2 + EPS)
    b2 = be2 - rm2 * a2
    # Precompute shift weights with zero-pad masks folded in; fold a2 into
    # shift_out's T-axis weights (exact).  Do NOT fold a1/b1 through shift_in
    # (the bias does not commute with zero padding).
    wmt_in, wmv_in = _weight_masks(ypos_in, xpos_in, offsets, T, V)
    wmt_out, wmv_out = _weight_masks(ypos_out, xpos_out, offsets, T, V, t_scale=a2)
    kp = dict(
        a1=a1.reshape(-1, 1), b1=b1.reshape(-1, 1), b2=b2.reshape(-1, 1),
        wmt_in=wmt_in, wmv_in=wmv_in, wmt_out=wmt_out, wmv_out=wmv_out,
        w=w_oi, cb=cb.reshape(-1, 1),
    )
    return raw, kp


# ------------------------------ plain-JAX reference ------------------------

def _ref_bn(x, g, b, rm, rv):
    inv = g / jnp.sqrt(rv + EPS)
    return (x - rm[None, :, None, None]) * inv[None, :, None, None] \
        + b[None, :, None, None]


def _ref_shift(x, ypos, xpos):
    """Bilinear sample of x (N,C,T,V) at (t + ypos[c], v + xpos[c]), zero pad."""
    N, C, T, V = x.shape
    t_src = jnp.arange(T, dtype=jnp.float32)[None, :, None] + ypos[:, None, None]
    v_src = jnp.arange(V, dtype=jnp.float32)[None, None, :] + xpos[:, None, None]
    t0 = jnp.floor(t_src)
    v0 = jnp.floor(v_src)
    ft = t_src - t0
    fv = v_src - v0
    cidx = jnp.arange(C)[:, None, None]

    def gather(ti, vi):
        valid = (ti >= 0) & (ti <= T - 1) & (vi >= 0) & (vi <= V - 1)
        tic = jnp.clip(ti, 0, T - 1).astype(jnp.int32)
        vic = jnp.clip(vi, 0, V - 1).astype(jnp.int32)
        g = x[:, cidx, tic, vic]
        return jnp.where(valid[None], g, 0.0)

    out = ((1 - ft) * (1 - fv))[None] * gather(t0, v0) \
        + ((1 - ft) * fv)[None] * gather(t0, v0 + 1) \
        + (ft * (1 - fv))[None] * gather(t0 + 1, v0) \
        + (ft * fv)[None] * gather(t0 + 1, v0 + 1)
    return out


def ref_forward(x, r):
    y = _ref_bn(x, r["g1"], r["be1"], r["rm1"], r["rv1"])
    y = _ref_shift(y, r["ypos_in"], r["xpos_in"])
    y = jnp.einsum("oi,nitv->notv", r["w_oi"], y,
                   precision=lax.Precision.HIGHEST) + r["cb"][None, :, None, None]
    y = jnp.maximum(y, 0.0)
    y = _ref_shift(y, r["ypos_out"], r["xpos_out"])
    y = _ref_bn(y, r["g2"], r["be2"], r["rm2"], r["rv2"])
    return y


# ----------------------------------- main -----------------------------------

if __name__ == "__main__":
    key = jax.random.PRNGKey(0)
    k_x, k_p = jax.random.split(key)

    # Shift_tcn applies bn2 = BatchNorm2d(in_channels) after producing
    # out_channels features, so the module only works with in == out channels.
    N, C, T, V = 2, 8, 16, 16            # T*V = 256 -> lane-dense last dim
    in_channels = out_channels = C
    init_scale = 1.0
    # stride=1 (constructor default).
    # TODO(synk): stride > 1 temporal subsampling of shift_out not implemented.
    K = int(math.ceil(init_scale))
    offsets = tuple(range(-K, K + 1))    # integer window covering |pos| < init_scale

    x = jax.random.normal(k_x, (N, C, T, V), jnp.float32)
    raw, kp = init_params(k_p, in_channels, out_channels, init_scale, offsets, T, V)

    out = shift_tcn_forward(x, kp, offsets)
    out = jax.block_until_ready(out)

    ref = ref_forward(x, raw)
    if not jnp.allclose(out, ref, atol=1e-3, rtol=1e-3):
        err = float(jnp.max(jnp.abs(out - ref)))
        raise AssertionError(f"mismatch vs reference, max abs err = {err}")
    print("KERNEL_OK")
</pallas_src>

<mosaic_0001>
module attributes {stable_mosaic.version = 11 : i64} {
  func.func @shift_tcn_kernel(%arg0: i32, %arg1: memref<2x8x256xf32, #tpu.memory_space<vmem>>, %arg2: memref<8x1xf32, #tpu.memory_space<vmem>>, %arg3: memref<8x1xf32, #tpu.memory_space<vmem>>, %arg4: memref<3x8x256xf32, #tpu.memory_space<vmem>>, %arg5: memref<3x8x256xf32, #tpu.memory_space<vmem>>, %arg6: memref<8x8xf32, #tpu.memory_space<vmem>>, %arg7: memref<8x1xf32, #tpu.memory_space<vmem>>, %arg8: memref<3x8x256xf32, #tpu.memory_space<vmem>>, %arg9: memref<3x8x256xf32, #tpu.memory_space<vmem>>, %arg10: memref<8x1xf32, #tpu.memory_space<vmem>>, %arg11: memref<2x8x256xf32, #tpu.memory_space<vmem>>) attributes {dimension_semantics = [#tpu.dimension_semantics<parallel>], iteration_bounds = array<i64: 1>, scalar_prefetch = 0 : i64, scratch_operands = 0 : i64, tpu.core_type = #tpu.core_type<tc>, window_params = [{transform_indices = @transform_0, window_bounds = array<i64: 2, 8, 256>}, {pipeline_mode = #tpu.pipeline_mode<synchronous>, transform_indices = @transform_1, window_bounds = array<i64: 8, 1>}, {pipeline_mode = #tpu.pipeline_mode<synchronous>, transform_indices = @transform_2, window_bounds = array<i64: 8, 1>}, {pipeline_mode = #tpu.pipeline_mode<synchronous>, transform_indices = @transform_3, window_bounds = array<i64: 3, 8, 256>}, {pipeline_mode = #tpu.pipeline_mode<synchronous>, transform_indices = @transform_4, window_bounds = array<i64: 3, 8, 256>}, {pipeline_mode = #tpu.pipeline_mode<synchronous>, transform_indices = @transform_5, window_bounds = array<i64: 8, 8>}, {pipeline_mode = #tpu.pipeline_mode<synchronous>, transform_indices = @transform_6, window_bounds = array<i64: 8, 1>}, {pipeline_mode = #tpu.pipeline_mode<synchronous>, transform_indices = @transform_7, window_bounds = array<i64: 3, 8, 256>}, {pipeline_mode = #tpu.pipeline_mode<synchronous>, transform_indices = @transform_8, window_bounds = array<i64: 3, 8, 256>}, {pipeline_mode = #tpu.pipeline_mode<synchronous>, transform_indices = @transform_9, window_bounds = array<i64: 8, 1>}, {transform_indices = @transform_10, window_bounds = array<i64: 2, 8, 256>}]} {
    %c0 = arith.constant 0 : index
    %c0_0 = arith.constant 0 : index
    %0 = vector.load %arg6[%c0, %c0_0] : memref<8x8xf32, #tpu.memory_space<vmem>>, vector<8x8xf32>
    %c0_1 = arith.constant 0 : index
    %c0_2 = arith.constant 0 : index
    %1 = vector.load %arg2[%c0_1, %c0_2] : memref<8x1xf32, #tpu.memory_space<vmem>>, vector<8x1xf32>
    %c0_3 = arith.constant 0 : index
    %c0_4 = arith.constant 0 : index
    %2 = vector.load %arg3[%c0_3, %c0_4] : memref<8x1xf32, #tpu.memory_space<vmem>>, vector<8x1xf32>
    %c0_5 = arith.constant 0 : index
    %c0_6 = arith.constant 0 : index
    %3 = vector.load %arg7[%c0_5, %c0_6] : memref<8x1xf32, #tpu.memory_space<vmem>>, vector<8x1xf32>
    %c0_7 = arith.constant 0 : index
    %c0_8 = arith.constant 0 : index
    %4 = vector.load %arg10[%c0_7, %c0_8] : memref<8x1xf32, #tpu.memory_space<vmem>>, vector<8x1xf32>
    %c0_9 = arith.constant 0 : index
    %c0_10 = arith.constant 0 : index
    %c0_11 = arith.constant 0 : index
    %5 = vector.load %arg1[%c0_9, %c0_10, %c0_11] : memref<2x8x256xf32, #tpu.memory_space<vmem>>, vector<1x8x256xf32>
    %6 = vector.shape_cast %5 : vector<1x8x256xf32> to vector<8x256xf32>
    %7 = vector.broadcast %1 : vector<8x1xf32> to vector<8x256xf32>
    %8 = arith.mulf %6, %7 : vector<8x256xf32>
    %9 = vector.broadcast %2 : vector<8x1xf32> to vector<8x256xf32>
    %10 = arith.addf %8, %9 : vector<8x256xf32>
    %c1_i32 = arith.constant 1 : i32
    %11 = tpu.dynamic_rotate %10 by %c1_i32 dim 1 : vector<8x256xf32>, i32 -> vector<8x256xf32>
    %c0_12 = arith.constant 0 : index
    %c0_13 = arith.constant 0 : index
    %c0_14 = arith.constant 0 : index
    %12 = vector.load %arg5[%c0_12, %c0_13, %c0_14] : memref<3x8x256xf32, #tpu.memory_space<vmem>>, vector<1x8x256xf32>
    %13 = vector.shape_cast %12 : vector<1x8x256xf32> to vector<8x256xf32>
    %14 = arith.mulf %13, %11 : vector<8x256xf32>
    %c1 = arith.constant 1 : index
    %c0_15 = arith.constant 0 : index
    %c0_16 = arith.constant 0 : index
    %15 = vector.load %arg5[%c1, %c0_15, %c0_16] : memref<3x8x256xf32, #tpu.memory_space<vmem>>, vector<1x8x256xf32>
    %16 = vector.shape_cast %15 : vector<1x8x256xf32> to vector<8x256xf32>
    %17 = arith.mulf %16, %10 : vector<8x256xf32>
    %18 = arith.addf %14, %17 : vector<8x256xf32>
    %c255_i32 = arith.constant 255 : i32
    %19 = tpu.dynamic_rotate %10 by %c255_i32 dim 1 : vector<8x256xf32>, i32 -> vector<8x256xf32>
    %c2 = arith.constant 2 : index
    %c0_17 = arith.constant 0 : index
    %c0_18 = arith.constant 0 : index
    %20 = vector.load %arg5[%c2, %c0_17, %c0_18] : memref<3x8x256xf32, #tpu.memory_space<vmem>>, vector<1x8x256xf32>
    %21 = vector.shape_cast %20 : vector<1x8x256xf32> to vector<8x256xf32>
    %22 = arith.mulf %21, %19 : vector<8x256xf32>
    %23 = arith.addf %18, %22 : vector<8x256xf32>
    %c16_i32 = arith.constant 16 : i32
    %24 = tpu.dynamic_rotate %23 by %c16_i32 dim 1 : vector<8x256xf32>, i32 -> vector<8x256xf32>
    %c0_19 = arith.constant 0 : index
    %c0_20 = arith.constant 0 : index
    %c0_21 = arith.constant 0 : index
    %25 = vector.load %arg4[%c0_19, %c0_20, %c0_21] : memref<3x8x256xf32, #tpu.memory_space<vmem>>, vector<1x8x256xf32>
    %26 = vector.shape_cast %25 : vector<1x8x256xf32> to vector<8x256xf32>
    %27 = arith.mulf %26, %24 : vector<8x256xf32>
    %c1_22 = arith.constant 1 : index
    %c0_23 = arith.constant 0 : index
    %c0_24 = arith.constant 0 : index
    %28 = vector.load %arg4[%c1_22, %c0_23, %c0_24] : memref<3x8x256xf32, #tpu.memory_space<vmem>>, vector<1x8x256xf32>
    %29 = vector.shape_cast %28 : vector<1x8x256xf32> to vector<8x256xf32>
    %30 = arith.mulf %29, %23 : vector<8x256xf32>
    %31 = arith.addf %27, %30 : vector<8x256xf32>
    %c240_i32 = arith.constant 240 : i32
    %32 = tpu.dynamic_rotate %23 by %c240_i32 dim 1 : vector<8x256xf32>, i32 -> vector<8x256xf32>
    %c2_25 = arith.constant 2 : index
    %c0_26 = arith.constant 0 : index
    %c0_27 = arith.constant 0 : index
    %33 = vector.load %arg4[%c2_25, %c0_26, %c0_27] : memref<3x8x256xf32, #tpu.memory_space<vmem>>, vector<1x8x256xf32>
    %34 = vector.shape_cast %33 : vector<1x8x256xf32> to vector<8x256xf32>
    %35 = arith.mulf %34, %32 : vector<8x256xf32>
    %36 = arith.addf %31, %35 : vector<8x256xf32>
    %cst = arith.constant dense<0.000000e+00> : vector<8x256xf32>
    %37 = tpu.matmul %0, %36, %cst {dimension_numbers = #tpu.dot_dimension_numbers<[1], [0], [0], [1], [0, 0, 1, 1], [], []>, precision = #tpu.contract_precision<fp32>} : vector<8x8xf32>, vector<8x256xf32>, vector<8x256xf32> -> vector<8x256xf32>
    %38 = vector.broadcast %3 : vector<8x1xf32> to vector<8x256xf32>
    %39 = arith.addf %37, %38 : vector<8x256xf32>
    %cst_28 = arith.constant 0.000000e+00 : f32
    %40 = vector.broadcast %cst_28 : f32 to vector<8x256xf32>
    %41 = arith.maximumf %39, %40 : vector<8x256xf32>
    %c1_i32_29 = arith.constant 1 : i32
    %42 = tpu.dynamic_rotate %41 by %c1_i32_29 dim 1 : vector<8x256xf32>, i32 -> vector<8x256xf32>
    %c0_30 = arith.constant 0 : index
    %c0_31 = arith.constant 0 : index
    %c0_32 = arith.constant 0 : index
    %43 = vector.load %arg9[%c0_30, %c0_31, %c0_32] : memref<3x8x256xf32, #tpu.memory_space<vmem>>, vector<1x8x256xf32>
    %44 = vector.shape_cast %43 : vector<1x8x256xf32> to vector<8x256xf32>
    %45 = arith.mulf %44, %42 : vector<8x256xf32>
    %c1_33 = arith.constant 1 : index
    %c0_34 = arith.constant 0 : index
    %c0_35 = arith.constant 0 : index
    %46 = vector.load %arg9[%c1_33, %c0_34, %c0_35] : memref<3x8x256xf32, #tpu.memory_space<vmem>>, vector<1x8x256xf32>
    %47 = vector.shape_cast %46 : vector<1x8x256xf32> to vector<8x256xf32>
    %48 = arith.mulf %47, %41 : vector<8x256xf32>
    %49 = arith.addf %45, %48 : vector<8x256xf32>
    %c255_i32_36 = arith.constant 255 : i32
    %50 = tpu.dynamic_rotate %41 by %c255_i32_36 dim 1 : vector<8x256xf32>, i32 -> vector<8x256xf32>
    %c2_37 = arith.constant 2 : index
    %c0_38 = arith.constant 0 : index
    %c0_39 = arith.constant 0 : index
    %51 = vector.load %arg9[%c2_37, %c0_38, %c0_39] : memref<3x8x256xf32, #tpu.memory_space<vmem>>, vector<1x8x256xf32>
    %52 = vector.shape_cast %51 : vector<1x8x256xf32> to vector<8x256xf32>
    %53 = arith.mulf %52, %50 : vector<8x256xf32>
    %54 = arith.addf %49, %53 : vector<8x256xf32>
    %c16_i32_40 = arith.constant 16 : i32
    %55 = tpu.dynamic_rotate %54 by %c16_i32_40 dim 1 : vector<8x256xf32>, i32 -> vector<8x256xf32>
    %c0_41 = arith.constant 0 : index
    %c0_42 = arith.constant 0 : index
    %c0_43 = arith.constant 0 : index
    %56 = vector.load %arg8[%c0_41, %c0_42, %c0_43] : memref<3x8x256xf32, #tpu.memory_space<vmem>>, vector<1x8x256xf32>
    %57 = vector.shape_cast %56 : vector<1x8x256xf32> to vector<8x256xf32>
    %58 = arith.mulf %57, %55 : vector<8x256xf32>
    %c1_44 = arith.constant 1 : index
    %c0_45 = arith.constant 0 : index
    %c0_46 = arith.constant 0 : index
    %59 = vector.load %arg8[%c1_44, %c0_45, %c0_46] : memref<3x8x256xf32, #tpu.memory_space<vmem>>, vector<1x8x256xf32>
    %60 = vector.shape_cast %59 : vector<1x8x256xf32> to vector<8x256xf32>
    %61 = arith.mulf %60, %54 : vector<8x256xf32>
    %62 = arith.addf %58, %61 : vector<8x256xf32>
    %c240_i32_47 = arith.constant 240 : i32
    %63 = tpu.dynamic_rotate %54 by %c240_i32_47 dim 1 : vector<8x256xf32>, i32 -> vector<8x256xf32>
    %c2_48 = arith.constant 2 : index
    %c0_49 = arith.constant 0 : index
    %c0_50 = arith.constant 0 : index
    %64 = vector.load %arg8[%c2_48, %c0_49, %c0_50] : memref<3x8x256xf32, #tpu.memory_space<vmem>>, vector<1x8x256xf32>
    %65 = vector.shape_cast %64 : vector<1x8x256xf32> to vector<8x256xf32>
    %66 = arith.mulf %65, %63 : vector<8x256xf32>
    %67 = arith.addf %62, %66 : vector<8x256xf32>
    %68 = vector.broadcast %4 : vector<8x1xf32> to vector<8x256xf32>
    %69 = arith.addf %67, %68 : vector<8x256xf32>
    %c0_51 = arith.constant 0 : index
    %c0_52 = arith.constant 0 : index
    %c0_53 = arith.constant 0 : index
    %70 = vector.load %arg11[%c0_51, %c0_52, %c0_53] : memref<2x8x256xf32, #tpu.memory_space<vmem>>, vector<1x8x256xf32>
    %71 = vector.shape_cast %70 : vector<1x8x256xf32> to vector<8x256xf32>
    %72 = vector.shape_cast %69 : vector<8x256xf32> to vector<1x8x256xf32>
    tpu.vector_store %arg11[%c0_51, %c0_52, %c0_53], %72 {strides = array<i32>} : memref<2x8x256xf32, #tpu.memory_space<vmem>>, vector<1x8x256xf32>,
    %c1_54 = arith.constant 1 : index
    %c0_55 = arith.constant 0 : index
    %c0_56 = arith.constant 0 : index
    %73 = vector.load %arg1[%c1_54, %c0_55, %c0_56] : memref<2x8x256xf32, #tpu.memory_space<vmem>>, vector<1x8x256xf32>
    %74 = vector.shape_cast %73 : vector<1x8x256xf32> to vector<8x256xf32>
    %75 = vector.broadcast %1 : vector<8x1xf32> to vector<8x256xf32>
    %76 = arith.mulf %74, %75 : vector<8x256xf32>
    %77 = vector.broadcast %2 : vector<8x1xf32> to vector<8x256xf32>
    %78 = arith.addf %76, %77 : vector<8x256xf32>
    %c1_i32_57 = arith.constant 1 : i32
    %79 = tpu.dynamic_rotate %78 by %c1_i32_57 dim 1 : vector<8x256xf32>, i32 -> vector<8x256xf32>
    %c0_58 = arith.constant 0 : index
    %c0_59 = arith.constant 0 : index
    %c0_60 = arith.constant 0 : index
    %80 = vector.load %arg5[%c0_58, %c0_59, %c0_60] : memref<3x8x256xf32, #tpu.memory_space<vmem>>, vector<1x8x256xf32>
    %81 = vector.shape_cast %80 : vector<1x8x256xf32> to vector<8x256xf32>
    %82 = arith.mulf %81, %79 : vector<8x256xf32>
    %c1_61 = arith.constant 1 : index
    %c0_62 = arith.constant 0 : index
    %c0_63 = arith.constant 0 : index
    %83 = vector.load %arg5[%c1_61, %c0_62, %c0_63] : memref<3x8x256xf32, #tpu.memory_space<vmem>>, vector<1x8x256xf32>
    %84 = vector.shape_cast %83 : vector<1x8x256xf32> to vector<8x256xf32>
    %85 = arith.mulf %84, %78 : vector<8x256xf32>
    %86 = arith.addf %82, %85 : vector<8x256xf32>
    %c255_i32_64 = arith.constant 255 : i32
    %87 = tpu.dynamic_rotate %78 by %c255_i32_64 dim 1 : vector<8x256xf32>, i32 -> vector<8x256xf32>
    %c2_65 = arith.constant 2 : index
    %c0_66 = arith.constant 0 : index
    %c0_67 = arith.constant 0 : index
    %88 = vector.load %arg5[%c2_65, %c0_66, %c0_67] : memref<3x8x256xf32, #tpu.memory_space<vmem>>, vector<1x8x256xf32>
    %89 = vector.shape_cast %88 : vector<1x8x256xf32> to vector<8x256xf32>
    %90 = arith.mulf %89, %87 : vector<8x256xf32>
    %91 = arith.addf %86, %90 : vector<8x256xf32>
    %c16_i32_68 = arith.constant 16 : i32
    %92 = tpu.dynamic_rotate %91 by %c16_i32_68 dim 1 : vector<8x256xf32>, i32 -> vector<8x256xf32>
    %c0_69 = arith.constant 0 : index
    %c0_70 = arith.constant 0 : index
    %c0_71 = arith.constant 0 : index
    %93 = vector.load %arg4[%c0_69, %c0_70, %c0_71] : memref<3x8x256xf32, #tpu.memory_space<vmem>>, vector<1x8x256xf32>
    %94 = vector.shape_cast %93 : vector<1x8x256xf32> to vector<8x256xf32>
    %95 = arith.mulf %94, %92 : vector<8x256xf32>
    %c1_72 = arith.constant 1 : index
    %c0_73 = arith.constant 0 : index
    %c0_74 = arith.constant 0 : index
    %96 = vector.load %arg4[%c1_72, %c0_73, %c0_74] : memref<3x8x256xf32, #tpu.memory_space<vmem>>, vector<1x8x256xf32>
    %97 = vector.shape_cast %96 : vector<1x8x256xf32> to vector<8x256xf32>
    %98 = arith.mulf %97, %91 : vector<8x256xf32>
    %99 = arith.addf %95, %98 : vector<8x256xf32>
    %c240_i32_75 = arith.constant 240 : i32
    %100 = tpu.dynamic_rotate %91 by %c240_i32_75 dim 1 : vector<8x256xf32>, i32 -> vector<8x256xf32>
    %c2_76 = arith.constant 2 : index
    %c0_77 = arith.constant 0 : index
    %c0_78 = arith.constant 0 : index
    %101 = vector.load %arg4[%c2_76, %c0_77, %c0_78] : memref<3x8x256xf32, #tpu.memory_space<vmem>>, vector<1x8x256xf32>
    %102 = vector.shape_cast %101 : vector<1x8x256xf32> to vector<8x256xf32>
    %103 = arith.mulf %102, %100 : vector<8x256xf32>
    %104 = arith.addf %99, %103 : vector<8x256xf32>
    %cst_79 = arith.constant dense<0.000000e+00> : vector<8x256xf32>
    %105 = tpu.matmul %0, %104, %cst_79 {dimension_numbers = #tpu.dot_dimension_numbers<[1], [0], [0], [1], [0, 0, 1, 1], [], []>, precision = #tpu.contract_precision<fp32>} : vector<8x8xf32>, vector<8x256xf32>, vector<8x256xf32> -> vector<8x256xf32>
    %106 = vector.broadcast %3 : vector<8x1xf32> to vector<8x256xf32>
    %107 = arith.addf %105, %106 : vector<8x256xf32>
    %cst_80 = arith.constant 0.000000e+00 : f32
    %108 = vector.broadcast %cst_80 : f32 to vector<8x256xf32>
    %109 = arith.maximumf %107, %108 : vector<8x256xf32>
    %c1_i32_81 = arith.constant 1 : i32
    %110 = tpu.dynamic_rotate %109 by %c1_i32_81 dim 1 : vector<8x256xf32>, i32 -> vector<8x256xf32>
    %c0_82 = arith.constant 0 : index
    %c0_83 = arith.constant 0 : index
    %c0_84 = arith.constant 0 : index
    %111 = vector.load %arg9[%c0_82, %c0_83, %c0_84] : memref<3x8x256xf32, #tpu.memory_space<vmem>>, vector<1x8x256xf32>
    %112 = vector.shape_cast %111 : vector<1x8x256xf32> to vector<8x256xf32>
    %113 = arith.mulf %112, %110 : vector<8x256xf32>
    %c1_85 = arith.constant 1 : index
    %c0_86 = arith.constant 0 : index
    %c0_87 = arith.constant 0 : index
    %114 = vector.load %arg9[%c1_85, %c0_86, %c0_87] : memref<3x8x256xf32, #tpu.memory_space<vmem>>, vector<1x8x256xf32>
    %115 = vector.shape_cast %114 : vector<1x8x256xf32> to vector<8x256xf32>
    %116 = arith.mulf %115, %109 : vector<8x256xf32>
    %117 = arith.addf %113, %116 : vector<8x256xf32>
    %c255_i32_88 = arith.constant 255 : i32
    %118 = tpu.dynamic_rotate %109 by %c255_i32_88 dim 1 : vector<8x256xf32>, i32 -> vector<8x256xf32>
    %c2_89 = arith.constant 2 : index
    %c0_90 = arith.constant 0 : index
    %c0_91 = arith.constant 0 : index
    %119 = vector.load %arg9[%c2_89, %c0_90, %c0_91] : memref<3x8x256xf32, #tpu.memory_space<vmem>>, vector<1x8x256xf32>
    %120 = vector.shape_cast %119 : vector<1x8x256xf32> to vector<8x256xf32>
    %121 = arith.mulf %120, %118 : vector<8x256xf32>
    %122 = arith.addf %117, %121 : vector<8x256xf32>
    %c16_i32_92 = arith.constant 16 : i32
    %123 = tpu.dynamic_rotate %122 by %c16_i32_92 dim 1 : vector<8x256xf32>, i32 -> vector<8x256xf32>
    %c0_93 = arith.constant 0 : index
    %c0_94 = arith.constant 0 : index
    %c0_95 = arith.constant 0 : index
    %124 = vector.load %arg8[%c0_93, %c0_94, %c0_95] : memref<3x8x256xf32, #tpu.memory_space<vmem>>, vector<1x8x256xf32>
    %125 = vector.shape_cast %124 : vector<1x8x256xf32> to vector<8x256xf32>
    %126 = arith.mulf %125, %123 : vector<8x256xf32>
    %c1_96 = arith.constant 1 : index
    %c0_97 = arith.constant 0 : index
    %c0_98 = arith.constant 0 : index
    %127 = vector.load %arg8[%c1_96, %c0_97, %c0_98] : memref<3x8x256xf32, #tpu.memory_space<vmem>>, vector<1x8x256xf32>
    %128 = vector.shape_cast %127 : vector<1x8x256xf32> to vector<8x256xf32>
    %129 = arith.mulf %128, %122 : vector<8x256xf32>
    %130 = arith.addf %126, %129 : vector<8x256xf32>
    %c240_i32_99 = arith.constant 240 : i32
    %131 = tpu.dynamic_rotate %122 by %c240_i32_99 dim 1 : vector<8x256xf32>, i32 -> vector<8x256xf32>
    %c2_100 = arith.constant 2 : index
    %c0_101 = arith.constant 0 : index
    %c0_102 = arith.constant 0 : index
    %132 = vector.load %arg8[%c2_100, %c0_101, %c0_102] : memref<3x8x256xf32, #tpu.memory_space<vmem>>, vector<1x8x256xf32>
    %133 = vector.shape_cast %132 : vector<1x8x256xf32> to vector<8x256xf32>
    %134 = arith.mulf %133, %131 : vector<8x256xf32>
    %135 = arith.addf %130, %134 : vector<8x256xf32>
    %136 = vector.broadcast %4 : vector<8x1xf32> to vector<8x256xf32>
    %137 = arith.addf %135, %136 : vector<8x256xf32>
    %c1_103 = arith.constant 1 : index
    %c0_104 = arith.constant 0 : index
    %c0_105 = arith.constant 0 : index
    %138 = vector.load %arg11[%c1_103, %c0_104, %c0_105] : memref<2x8x256xf32, #tpu.memory_space<vmem>>, vector<1x8x256xf32>
    %139 = vector.shape_cast %138 : vector<1x8x256xf32> to vector<8x256xf32>
    %140 = vector.shape_cast %137 : vector<8x256xf32> to vector<1x8x256xf32>
    tpu.vector_store %arg11[%c1_103, %c0_104, %c0_105], %140 {strides = array<i32>} : memref<2x8x256xf32, #tpu.memory_space<vmem>>, vector<1x8x256xf32>,
    return
  }
  func.func @transform_0(%arg0: i32) -> (i32, i32, i32) {
    %c0_i32 = arith.constant 0 : i32
    %c0_i32_0 = arith.constant 0 : i32
    %c0_i32_1 = arith.constant 0 : i32
    return %arg0, %c0_i32, %c0_i32_0 : i32, i32, i32
  }
  func.func @transform_1(%arg0: i32) -> (i32, i32) {
    %c0_i32 = arith.constant 0 : i32
    %c0_i32_0 = arith.constant 0 : i32
    %c0_i32_1 = arith.constant 0 : i32
    return %c0_i32, %c0_i32_0 : i32, i32
  }
  func.func @transform_2(%arg0: i32) -> (i32, i32) {
    %c0_i32 = arith.constant 0 : i32
    %c0_i32_0 = arith.constant 0 : i32
    %c0_i32_1 = arith.constant 0 : i32
    return %c0_i32, %c0_i32_0 : i32, i32
  }
  func.func @transform_3(%arg0: i32) -> (i32, i32, i32) {
    %c0_i32 = arith.constant 0 : i32
    %c0_i32_0 = arith.constant 0 : i32
    %c0_i32_1 = arith.constant 0 : i32
    %c0_i32_2 = arith.constant 0 : i32
    return %c0_i32, %c0_i32_0, %c0_i32_1 : i32, i32, i32
  }
  func.func @transform_4(%arg0: i32) -> (i32, i32, i32) {
    %c0_i32 = arith.constant 0 : i32
    %c0_i32_0 = arith.constant 0 : i32
    %c0_i32_1 = arith.constant 0 : i32
    %c0_i32_2 = arith.constant 0 : i32
    return %c0_i32, %c0_i32_0, %c0_i32_1 : i32, i32, i32
  }
  func.func @transform_5(%arg0: i32) -> (i32, i32) {
    %c0_i32 = arith.constant 0 : i32
    %c0_i32_0 = arith.constant 0 : i32
    %c0_i32_1 = arith.constant 0 : i32
    return %c0_i32, %c0_i32_0 : i32, i32
  }
  func.func @transform_6(%arg0: i32) -> (i32, i32) {
    %c0_i32 = arith.constant 0 : i32
    %c0_i32_0 = arith.constant 0 : i32
    %c0_i32_1 = arith.constant 0 : i32
    return %c0_i32, %c0_i32_0 : i32, i32
  }
  func.func @transform_7(%arg0: i32) -> (i32, i32, i32) {
    %c0_i32 = arith.constant 0 : i32
    %c0_i32_0 = arith.constant 0 : i32
    %c0_i32_1 = arith.constant 0 : i32
    %c0_i32_2 = arith.constant 0 : i32
    return %c0_i32, %c0_i32_0, %c0_i32_1 : i32, i32, i32
  }
  func.func @transform_8(%arg0: i32) -> (i32, i32, i32) {
    %c0_i32 = arith.constant 0 : i32
    %c0_i32_0 = arith.constant 0 : i32
    %c0_i32_1 = arith.constant 0 : i32
    %c0_i32_2 = arith.constant 0 : i32
    return %c0_i32, %c0_i32_0, %c0_i32_1 : i32, i32, i32
  }
  func.func @transform_9(%arg0: i32) -> (i32, i32) {
    %c0_i32 = arith.constant 0 : i32
    %c0_i32_0 = arith.constant 0 : i32
    %c0_i32_1 = arith.constant 0 : i32
    return %c0_i32, %c0_i32_0 : i32, i32
  }
  func.func @transform_10(%arg0: i32) -> (i32, i32, i32) {
    %c0_i32 = arith.constant 0 : i32
    %c0_i32_0 = arith.constant 0 : i32
    %c0_i32_1 = arith.constant 0 : i32
    return %arg0, %c0_i32, %c0_i32_0 : i32, i32, i32
  }
}

</mosaic_0001>

<bundles_post_ra>
// kernel: tpu_custom_call.1
= control target key start
LH: loop header
LB: loop body
LE: loop exit
PB: predicated region body
PF: predicated region fallthrough
CT: control target
= control target key end

     0   :  { %15 = vsyncpa [#allocation3], 0  ;;  %s1760_s0 = inlined_call_operand.hbm [shape: f32[2,8,256], index: 0, kind: input, shape index: {}]   ;;  %s1761_s1 = inlined_call_operand.vmem [shape: f32[8,1], index: 1, kind: input, shape index: {}]   ;;  %s1762_s2 = inlined_call_operand.vmem [shape: f32[8,1], index: 2, kind: input, shape index: {}]   ;;  %s1763_s3 = inlined_call_operand.hbm [shape: f32[3,8,256], index: 3, kind: input, shape index: {}]   ;;  %s1764_s4 = inlined_call_operand.hbm [shape: f32[3,8,256], index: 4, kind: input, shape index: {}]   ;;  %s1765_s5 = inlined_call_operand.hbm [shape: f32[8,8], index: 5, kind: input, shape index: {}]   ;;  %s1766_s6 = inlined_call_operand.vmem [shape: f32[8,1], index: 6, kind: input, shape index: {}]   ;;  %s1767_s7 = inlined_call_operand.vmem [shape: f32[3,8,256], index: 7, kind: input, shape index: {}]   ;;  %s1768_s8 = inlined_call_operand.hbm [shape: f32[3,8,256], index: 8, kind: input, shape index: {}]   ;;  %s1769_s9 = inlined_call_operand.vmem [shape: f32[8,1], index: 9, kind: input, shape index: {}]   ;;  %s1770_s10 = inlined_call_operand.hbm [shape: f32[2,8,256], index: 10, kind: output, shape index: {}]  }
   0x1   :  { %16 = vsyncpa [#allocation6], 0 }
   0x2   :  { %17 = vsyncpa [#allocation9], 0 }
   0x3   :  { %18 = vsyncpa [#allocation4], 0  ;;  %s1495_s13 = smov [#allocation5]   ;;  %s1496_s15 = smov [#allocation8]  }
   0x4   :  { %s40_s14 = sshll.u32 %s1495_s13, 4  ;;  %s65_s16 = sshll.u32 %s1496_s15, 4  ;;  %s41_s14 = int_to_ptr.vmem [resolvable:$true] %s40_s14  ;;  %s66_s16 = int_to_ptr.vmem [resolvable:$true] %s65_s16 }
   0x5   :  { %s1375_s17 = scalar_lea.vmem %s41_s14, 768  ;;  %p1380_p1 = scmp.lt.s32.totalorder %s41_s14, %s41_s14 }
   0x6   :  { %p1376_p0 = scmp.ne.s32.totalorder %s41_s14, %s1375_s17  ;;  %p1381_p2 = scmp.lt.s32.totalorder %s1375_s17, %s1375_s17 }
   0x8   :  { %p1382_p3 = por %p1381_p2, %p1380_p1 }
   0xa   :  { %p1383_p4 = pnand %p1382_p3, %p1376_p0 }
   0xc   :  { %1386 = shalt.err (!%p1383_p4)
}
   0xd   :  { %s1497_s18 = smov 256   ;;  %s1498_s19 = smov 16  }
   0xe   :  { %46 = dma.hbm_to_vmem [thread:$0]  %s1763_s3, 768, %s41_s14, [#allocation6], %s1497_s18, %s1497_s18, %s1498_s19  }
   0xf   :  { %s1395_s22 = scalar_lea.vmem %s66_s16, 128  ;;  %p1400_p6 = scmp.lt.s32.totalorder %s66_s16, %s66_s16 }
  0x10   :  { %p1396_p5 = scmp.ne.s32.totalorder %s66_s16, %s1395_s22  ;;  %p1401_p7 = scmp.lt.s32.totalorder %s1395_s22, %s1395_s22 }
  0x12   :  { %p1402_p8 = por %p1401_p7, %p1400_p6 }
  0x14   :  { %p1403_p9 = pnand %p1402_p8, %p1396_p5 }
  0x16   :  { %1406 = shalt.err (!%p1403_p9)
}
  0x17   :  { %68 = dma.hbm_to_vmem [thread:$0]  %s1765_s5, 128, %s66_s16, [#allocation9]  }
  0x18   :  { %s1499_s25 = smov [#allocation2]   ;;  %s1500_s27 = smov [#allocation7]  }
  0x19   :  { %s24_s26 = sshll.u32 %s1499_s25, 4  ;;  %s52_s28 = sshll.u32 %s1500_s27, 4  ;;  %s25_s26 = int_to_ptr.vmem [resolvable:$true] %s24_s26  ;;  %s53_s28 = int_to_ptr.vmem [resolvable:$true] %s52_s28 }
  0x1a   :  { %s1415_s29 = scalar_lea.vmem %s25_s26, 512  ;;  %p1420_p11 = scmp.lt.s32.totalorder %s25_s26, %s25_s26 }
  0x1b   :  { %p1416_p10 = scmp.ne.s32.totalorder %s25_s26, %s1415_s29  ;;  %p1421_p12 = scmp.lt.s32.totalorder %s1415_s29, %s1415_s29 }
  0x1d   :  { %p1422_p13 = por %p1421_p12, %p1420_p11 }
  0x1f   :  { %p1423_p0 = pnand %p1422_p13, %p1416_p10 }
  0x21   :  { %1426 = shalt.err (!%p1423_p0)
}
  0x22   :  { %30 = dma.hbm_to_vmem [thread:$0]  %s1760_s0, 512, %s25_s26, [#allocation3], %s1497_s18, %s1497_s18, %s1498_s19  }
  0x23   :  { %s1435_s5 = scalar_lea.vmem %s53_s28, 768  ;;  %p1440_p2 = scmp.lt.s32.totalorder %s53_s28, %s53_s28 }
  0x24   :  { %p1436_p1 = scmp.ne.s32.totalorder %s53_s28, %s1435_s5  ;;  %p1441_p3 = scmp.lt.s32.totalorder %s1435_s5, %s1435_s5 }
  0x26   :  { %p1442_p4 = por %p1441_p3, %p1440_p2 }
  0x28   :  { %p1443_p5 = pnand %p1442_p4, %p1436_p1 }
  0x2a   :  { %1446 = shalt.err (!%p1443_p5)
}
  0x2b   :  { %58 = dma.hbm_to_vmem [thread:$0]  %s1764_s4, 768, %s53_s28, [#allocation6], %s1497_s18, %s1497_s18, %s1498_s19  }
  0x2c   :  { %s1501_s13 = smov [#allocation10]  }
  0x2d   :  { %s78_s14 = sshll.u32 %s1501_s13, 4  ;;  %s79_s14 = int_to_ptr.vmem [resolvable:$true] %s78_s14 }
  0x2e   :  { %s1455_s15 = scalar_lea.vmem %s79_s14, 768  ;;  %p1460_p7 = scmp.lt.s32.totalorder %s79_s14, %s79_s14 }
  0x2f   :  { %p1456_p6 = scmp.ne.s32.totalorder %s79_s14, %s1455_s15  ;;  %p1461_p8 = scmp.lt.s32.totalorder %s1455_s15, %s1455_s15 }
  0x31   :  { %p1462_p9 = por %p1461_p8, %p1460_p7 }
  0x33   :  { %p1463_p10 = pnand %p1462_p9, %p1456_p6 }
  0x35   :  { %1466 = shalt.err (!%p1463_p10)
}
  0x36   :  { %84 = dma.hbm_to_vmem [thread:$0]  %s1768_s8, 768, %s79_s14, [#allocation9], %s1497_s18, %s1497_s18, %s1498_s19  }
  0x37   :  { %1487 = dma.done.wait [#allocation3], 512  }
  0x38   :  { %1488 = vsyncadd [#allocation3], 4294966784 }
  0x39   :  { %1489 = dma.done.wait [#allocation6], 1536  }
  0x3a   :  { %1490 = vsyncadd [#allocation6], 4294965760 }
  0x3b   :  { %1491 = dma.done.wait [#allocation9], 896  }
  0x3c   :  { %1492 = vsyncadd [#allocation9], 4294966400  ;;  %v1502_v0 = vmov 0   ;;  %v103_v1 = vld [vmem:[%s1761_s1] sm:$0xff]  ;;  %v108_v6 = vld [vmem:[#allocation2 + $0x8] sm:$0xff]  ;;  %s1503_s8 = smov 127   ;;  %v127_v17 = vlaneseq }
  0x3d   :  { %1365 = vset.pattern.permute.xlu0 %v1502_v0  ;;  %1366 = vset.pattern.permute.xlu1 %v1502_v0  ;;  %v104_v2 = vld [vmem:[%s1762_s2] sm:$0xff]  ;;  %v735_v7 = vld [vmem:[#allocation2 + $0x10] sm:$0xff]  ;;  %s1504_s22 = smov 1   ;;  %v736_v14 = vld [vmem:[#allocation2 + $0x18] sm:$0xff]  ;;  %v1505_v50 = vmov 0.0   ;;  %s1506_s1 = smov 112  }
  0x3e   :  { %111 = vperm.xlu0 %1365, %v103_v1   ;;  %v107_v3 = vld [vmem:[#allocation2] sm:$0xff]  ;;  %v1604_v18 = vand.u32 127, %v127_v17  ;;  %v132_v20 = vld [vmem:[#allocation7] sm:$0xff]  ;;  %v133_v21 = vld [vmem:[#allocation7 + $0x8] sm:$0xff]  ;;  %264 = vmatprep.mubr.f32.mxu0 %v1505_v50  ;;  %vm194_vm2 = vcmask 64512  }
  0x3f   :  { %v137_v24 = vld [vmem:[#allocation7 + $0x10] sm:$0xff]  ;;  %v138_v25 = vld [vmem:[#allocation7 + $0x18] sm:$0xff]  ;;  %v151_v30 = vld [vmem:[#allocation7 + $0x20] sm:$0xff]  ;;  %350 = vmatprep.mubr.f32.mxu1 %v1505_v50 }
  0x40   :  { %vm129_vm0 = vcmp.lt.s32.totalorder %v1604_v18, 1  ;;  %vm147_vm1 = vcmp.lt.s32.totalorder %v1604_v18, 127  ;;  %v152_v31 = vld [vmem:[#allocation7 + $0x28] sm:$0xff]  ;;  %v105_v62 = vld [vmem:[%s1766_s6] sm:$0xff]  ;;  %vm161_vm3 = vcmp.lt.s32.totalorder %v1604_v18, 16  ;;  %vm179_vm4 = vcmp.lt.s32.totalorder %v1604_v18, 112 }
  0x41   :  { %v102_v63 = vld [vmem:[#allocation8] sm:$0xff] }
  0x42   :  { %118 = vperm.xlu0 %1365, %v104_v2   ;;  %v196_v0 = vsel %vm194_vm2, %v102_v63, 0 }
  0x43   :  { %v1637_v1 = vand.u32 4294901760, %v196_v0 }
  0x45   :  { %v1640_v2 = vsub.f32 %v196_v0, %v1637_v1 }
  0xb9   :  { %v112_v4 = vpop.permute.xlu0 %111 }
  0xba   :  { %v114_v5 = vmul.f32 %v112_v4, %v107_v3  ;;  %v115_v10 = vmul.f32 %v112_v4, %v108_v6  ;;  %v737_v11 = vmul.f32 %v735_v7, %v112_v4  ;;  %v738_v15 = vmul.f32 %v736_v14, %v112_v4  ;;  %v164_v3 = vld [vmem:[#allocation5] sm:$0xff]  ;;  %v165_v4 = vld [vmem:[#allocation5 + $0x8] sm:$0xff]  ;;  %v169_v7 = vld [vmem:[#allocation5 + $0x10] sm:$0xff] }
  0xbb   :  { %v183_v14 = vld [vmem:[#allocation5 + $0x20] sm:$0xff] }
  0xbd   :  { %v119_v8 = vpop.permute.xlu0 %118 }
  0xbe   :  { %v121_v9 = vadd.f32 %v119_v8, %v114_v5  ;;  %v122_v12 = vadd.f32 %v119_v8, %v115_v10  ;;  %v739_v13 = vadd.f32 %v737_v11, %v119_v8  ;;  %v740_v16 = vadd.f32 %v738_v15, %v119_v8  ;;  %v170_v8 = vld [vmem:[#allocation5 + $0x18] sm:$0xff]  ;;  %v184_v15 = vld [vmem:[#allocation5 + $0x28] sm:$0xff] }
  0xbf   :  { %v1648_v11 = vand.u32 4294901760, %v1640_v2 }
  0xc0   :  { %143 = vrot.lane.b32.xlu0 %v121_v9, %s1503_s8  ;;  %123 = vrot.lane.b32.xlu1 %v121_v9, %s1504_s22  ;;  %v140_v32 = vmul.f32 %v138_v25, %v122_v12  ;;  %v139_v33 = vmul.f32 %v137_v24, %v121_v9  ;;  %v753_v49 = vmul.f32 %v739_v13, %v137_v24 }
  0xc1   :  { %v754_v52 = vmul.f32 %v740_v16, %v138_v25 }
  0xc4   :  { %125 = vrot.lane.b32.xlu1 %v122_v12, %s1504_s22  ;;  %741 = vrot.lane.b32.xlu0 %v739_v13, %s1504_s22 }
  0xc8   :  { %145 = vrot.lane.b32.xlu1 %v122_v12, %s1503_s8  ;;  %757 = vrot.lane.b32.xlu0 %v739_v13, %s1503_s8 }
  0xcc   :  { %743 = vrot.lane.b32.xlu1 %v740_v16, %s1504_s22 }
  0xd0   :  { %759 = vrot.lane.b32.xlu1 %v740_v16, %s1503_s8 }
 0x132   :  { %v124_v19 = vpop.permute.xlu1 %123  ;;  %v144_v22 = vpop.permute.xlu0 %143 }
 0x136   :  { %v126_v23 = vpop.permute.xlu1 %125  ;;  %v742_v39 = vpop.permute.xlu0 %741 }
 0x137   :  { %v130_v26 = vsel %vm129_vm0, %v124_v19, %v126_v23  ;;  %v131_v27 = vsel %vm129_vm0, %v126_v23, %v124_v19  ;;  %v268_v23 = vsub.f32 %v1640_v2, %v1648_v11 }
 0x138   :  { %v134_v28 = vmul.f32 %v132_v20, %v131_v27  ;;  %v135_v29 = vmul.f32 %v133_v21, %v130_v26 }
 0x13a   :  { %v146_v34 = vpop.permute.xlu1 %145  ;;  %v141_v37 = vadd.f32 %v139_v33, %v134_v28  ;;  %v142_v38 = vadd.f32 %v140_v32, %v135_v29  ;;  %v758_v51 = vpop.permute.xlu0 %757 }
 0x13b   :  { %v148_v35 = vsel %vm147_vm1, %v144_v22, %v146_v34  ;;  %v149_v36 = vsel %vm147_vm1, %v146_v34, %v144_v22  ;;  %v269_v34 = vand.u32 4294901760, %v268_v23 }
 0x13c   :  { %v153_v40 = vmul.f32 %v151_v30, %v148_v35  ;;  %v154_v41 = vmul.f32 %v152_v31, %v149_v36 }
 0x13e   :  { %v744_v42 = vpop.permute.xlu1 %743  ;;  %v156_v43 = vadd.f32 %v154_v41, %v142_v38  ;;  %v155_v44 = vadd.f32 %v153_v40, %v141_v37 }
 0x13f   :  { %v745_v45 = vsel %vm129_vm0, %v742_v39, %v744_v42  ;;  %v746_v46 = vsel %vm129_vm0, %v744_v42, %v742_v39 }
 0x140   :  { %v749_v47 = vmul.f32 %v746_v46, %v132_v20  ;;  %v750_v48 = vmul.f32 %v745_v45, %v133_v21  ;;  %159 = vrot.lane.b32.xlu1 %v156_v43, %s1498_s19  ;;  %157 = vrot.lane.b32.xlu0 %v155_v44, %s1498_s19  ;;  %v171_v16 = vmul.f32 %v169_v7, %v155_v44 }
 0x141   :  { %v172_v17 = vmul.f32 %v170_v8, %v156_v43 }
 0x142   :  { %v760_v53 = vpop.permute.xlu1 %759  ;;  %v755_v54 = vadd.f32 %v753_v49, %v749_v47  ;;  %v756_v57 = vadd.f32 %v754_v52, %v750_v48 }
 0x143   :  { %v761_v55 = vsel %vm147_vm1, %v758_v51, %v760_v53  ;;  %v762_v56 = vsel %vm147_vm1, %v760_v53, %v758_v51 }
 0x144   :  { %v765_v58 = vmul.f32 %v761_v55, %v151_v30  ;;  %v766_v59 = vmul.f32 %v762_v56, %v152_v31  ;;  %177 = vrot.lane.b32.xlu1 %v156_v43, %s1506_s1  ;;  %175 = vrot.lane.b32.xlu0 %v155_v44, %s1506_s1 }
 0x146   :  { %v768_v60 = vadd.f32 %v766_v59, %v756_v57  ;;  %v767_v61 = vadd.f32 %v765_v58, %v755_v54 }
 0x148   :  { %771 = vrot.lane.b32.xlu1 %v768_v60, %s1498_s19  ;;  %769 = vrot.lane.b32.xlu0 %v767_v61, %s1498_s19  ;;  %v782_v39 = vmul.f32 %v768_v60, %v170_v8  ;;  %v781_v40 = vmul.f32 %v767_v61, %v169_v7 }
 0x14c   :  { %787 = vrot.lane.b32.xlu1 %v768_v60, %s1506_s1  ;;  %785 = vrot.lane.b32.xlu0 %v767_v61, %s1506_s1 }
 0x150   :  { %191 = vperm.xlu0 %1365, %v105_v62  }
 0x1b2   :  { %v160_v5 = vpop.permute.xlu1 %159  ;;  %v158_v6 = vpop.permute.xlu0 %157 }
 0x1b3   :  { %v162_v9 = vsel %vm161_vm3, %v158_v6, %v160_v5  ;;  %v163_v10 = vsel %vm161_vm3, %v160_v5, %v158_v6 }
 0x1b4   :  { %v166_v12 = vmul.f32 %v164_v3, %v163_v10  ;;  %v167_v13 = vmul.f32 %v165_v4, %v162_v9 }
 0x1b6   :  { %v178_v19 = vpop.permute.xlu1 %177  ;;  %v176_v20 = vpop.permute.xlu0 %175  ;;  %v173_v24 = vadd.f32 %v171_v16, %v166_v12  ;;  %v174_v25 = vadd.f32 %v172_v17, %v167_v13 }
 0x1b7   :  { %v180_v21 = vsel %vm179_vm4, %v176_v20, %v178_v19  ;;  %v181_v22 = vsel %vm179_vm4, %v178_v19, %v176_v20 }
 0x1b8   :  { %v185_v26 = vmul.f32 %v183_v14, %v180_v21  ;;  %v186_v27 = vmul.f32 %v184_v15, %v181_v22 }
 0x1ba   :  { %v187_v28 = vadd.f32 %v185_v26, %v173_v24  ;;  %v188_v29 = vadd.f32 %v186_v27, %v174_v25  ;;  %v772_v30 = vpop.permute.xlu1 %771  ;;  %v770_v31 = vpop.permute.xlu0 %769 }
 0x1bb   :  { %v773_v32 = vsel %vm161_vm3, %v770_v31, %v772_v30  ;;  %v774_v33 = vsel %vm161_vm3, %v772_v30, %v770_v31 }
 0x1bc   :  { %v228_v35 = vand.u32 4294901760, %v188_v29  ;;  %v230_v36 = vand.u32 4294901760, %v187_v28  ;;  %v777_v37 = vmul.f32 %v774_v33, %v164_v3  ;;  %v778_v38 = vmul.f32 %v773_v32, %v165_v4 }
 0x1be   :  { %v313_v41 = vsub.f32 %v187_v28, %v230_v36  ;;  %v788_v42 = vpop.permute.xlu1 %787  ;;  %229 = vmatprep.subr.mxu0 %v228_v35  ;;  %v786_v43 = vpop.permute.xlu0 %785  ;;  %v307_v44 = vsub.f32 %v188_v29, %v228_v35  ;;  %v783_v45 = vadd.f32 %v781_v40, %v777_v37  ;;  %v784_v46 = vadd.f32 %v782_v39, %v778_v38 }
 0x1bf   :  { %v789_v47 = vsel %vm179_vm4, %v786_v43, %v788_v42  ;;  %v790_v48 = vsel %vm179_vm4, %v788_v42, %v786_v43  ;;  %231 = vmatpush1.msra.mxu0 %v230_v36 }
 0x1c0   :  { %v793_v49 = vmul.f32 %v789_v47, %v183_v14  ;;  %v794_v51 = vmul.f32 %v790_v48, %v184_v15  ;;  %270 = vmatmul.mubr.f32.vlgmr.msra.gmra.mxu0 %v269_v34  ;;  %390 = vmatprep.subr.mxu0 %v307_v44  ;;  %v308_v52 = vand.u32 4294901760, %v307_v44  ;;  %v314_v53 = vand.u32 4294901760, %v313_v41 }
 0x1c1   :  { %393 = vmatpush1.msra.mxu0 %v313_v41  ;;  %426 = vmatprep.mubr.f32.mxu0 %v1505_v50 }
 0x1c2   :  { %v795_v54 = vadd.f32 %v793_v49, %v783_v45  ;;  %v796_v55 = vadd.f32 %v794_v51, %v784_v46  ;;  %544 = vmatprep.subr.mxu0 %v308_v52  ;;  %v309_v56 = vsub.f32 %v307_v44, %v308_v52  ;;  %v315_v57 = vsub.f32 %v313_v41, %v314_v53 }
 0x1c4   :  { %v827_v58 = vand.u32 4294901760, %v796_v55  ;;  %v829_v59 = vand.u32 4294901760, %v795_v54  ;;  %429 = vmatmul.mubr.f32.vlgmr.msra.gmra.mxu0 %v1640_v2  ;;  %v310_v60 = vand.u32 4294901760, %v309_v56  ;;  %v316_v61 = vand.u32 4294901760, %v315_v57 }
 0x1c5   :  { %548 = vmatpush1.msra.mxu0 %v314_v53  ;;  %581 = vmatprep.mubr.f32.mxu0 %v1505_v50 }
 0x1c6   :  { %v912_v62 = vsub.f32 %v795_v54, %v829_v59  ;;  %311 = vmatprep.subr.mxu1 %v310_v60  ;;  %828 = vmatprep.subr.mxu0 %v827_v58  ;;  %v906_v63 = vsub.f32 %v796_v55, %v827_v58  ;;  %v106_v60 = vld [vmem:[%s1769_s9] sm:$0xff] }
 0x1c7   :  { %317 = vmatpush1.msra.mxu1 %v316_v61 }
 0x1c8   :  { %352 = vmatmul.mubr.f32.vlgmr.msra.gmra.mxu1 %v1637_v1  ;;  %466 = vmatprep.subr.mxu1 %v228_v35  ;;  %v907_v0 = vand.u32 4294901760, %v906_v63  ;;  %v913_v3 = vand.u32 4294901760, %v912_v62 }
 0x1c9   :  { %583 = vmatmul.mubr.f32.vlgmr.msra.gmra.mxu0 %v1637_v1  ;;  %468 = vmatpush1.msra.mxu1 %v230_v36 }
 0x1ca   :  { %830 = vmatpush1.msra.mxu0 %v829_v59  ;;  %620 = vmatprep.subr.mxu1 %v228_v35  ;;  %v908_v4 = vsub.f32 %v906_v63, %v907_v0  ;;  %v914_v5 = vsub.f32 %v912_v62, %v913_v3 }
 0x1cb   :  { %989 = vmatprep.subr.mxu0 %v906_v63  ;;  %501 = vmatprep.mubr.f32.mxu1 %v1505_v50  ;;  %v192_v10 = vpop.permute.xlu0 %191  ;;  %v672_v63 = vld [vmem:[#allocation10 + $0x8] sm:$0xff] }
 0x1cc   :  { %863 = vmatprep.mubr.f32.mxu0 %v1505_v50  ;;  %505 = vmatmul.mubr.f32.vlgmr.msra.gmra.mxu1 %v1648_v11  ;;  %v909_v6 = vand.u32 4294901760, %v908_v4  ;;  %v915_v7 = vand.u32 4294901760, %v914_v5  ;;  %v677_v4 = vld [vmem:[#allocation10 + $0x18] sm:$0xff] }
 0x1cd   :  { %622 = vmatpush1.msra.mxu1 %v230_v36  ;;  %869 = vmatmul.mubr.f32.vlgmr.msra.gmra.mxu0 %v269_v34 }
 0x1ce   :  { %992 = vmatpush1.msra.mxu0 %v912_v62  ;;  %910 = vmatprep.subr.mxu1 %v909_v6  ;;  %v671_v62 = vld [vmem:[#allocation10] sm:$0xff] }
 0x1cf   :  { %1143 = vmatprep.subr.mxu0 %v907_v0  ;;  %655 = vmatprep.mubr.f32.mxu1 %v1505_v50 }
 0x1d0   :  { %1025 = vmatprep.mubr.f32.mxu0 %v1505_v50  ;;  %657 = vmatmul.mubr.f32.vlgmr.msra.gmra.mxu1 %v1637_v1 }
 0x1d1   :  { %916 = vmatpush1.msra.mxu1 %v915_v7  ;;  %1028 = vmatmul.mubr.f32.vlgmr.msra.gmra.mxu0 %v1640_v2 }
 0x1d2   :  { %1147 = vmatpush1.msra.mxu0 %v913_v3  ;;  %1065 = vmatprep.subr.mxu1 %v827_v58  ;;  %v676_v3 = vld [vmem:[#allocation10 + $0x10] sm:$0xff] }
 0x1d3   :  { %949 = vmatprep.mubr.f32.mxu1 %v1505_v50  ;;  %1180 = vmatprep.mubr.f32.mxu0 %v1505_v50 }
 0x1d4   :  { %951 = vmatmul.mubr.f32.vlgmr.msra.gmra.mxu1 %v1637_v1 }
 0x1d5   :  { %1067 = vmatpush1.msra.mxu1 %v829_v59  ;;  %1100 = vmatprep.mubr.f32.mxu1 %v1505_v50 }
 0x1d6   :  { %1219 = vmatprep.subr.mxu1 %v827_v58  ;;  %1182 = vmatmul.mubr.f32.vlgmr.msra.gmra.mxu0 %v1637_v1 }
 0x1d8   :  { %1104 = vmatmul.mubr.f32.vlgmr.msra.gmra.mxu1 %v1648_v11 }
 0x1d9   :  { %1221 = vmatpush1.msra.mxu1 %v829_v59  ;;  %1254 = vmatprep.mubr.f32.mxu1 %v1505_v50 }
 0x1dc   :  { %1256 = vmatmul.mubr.f32.vlgmr.msra.gmra.mxu1 %v1637_v1 }
 0x280   :  { %v271_v2 = vpop.f32.mrf.mxu0 }
 0x281   :  { %v272_v13 = vadd.f32 %v271_v2, %v192_v10 }
 0x282   :  { %v273_v8 = vpop.f32.mrf.mxu0 }
 0x283   :  { %v274_v15 = vadd.f32 %v273_v8, %v192_v10  ;;  %v689_v8 = vld [vmem:[#allocation10 + $0x20] sm:$0xff] }
 0x284   :  { %v430_v9 = vpop.f32.mrf.mxu0 }
 0x286   :  { %v432_v12 = vpop.f32.mrf.mxu0 }
 0x288   :  { %v353_v14 = vpop.f32.mrf.mxu1 }
 0x289   :  { %v354_v16 = vadd.f32 %v353_v14, %v272_v13  ;;  %v584_v17 = vpop.f32.mrf.mxu0 }
 0x28a   :  { %v355_v19 = vpop.f32.mrf.mxu1 }
 0x28b   :  { %v356_v20 = vadd.f32 %v355_v19, %v274_v15  ;;  %v586_v21 = vpop.f32.mrf.mxu0  ;;  %v431_v22 = vadd.f32 %v430_v9, %v354_v16  ;;  %v690_v9 = vld [vmem:[#allocation10 + $0x28] sm:$0xff] }
 0x28c   :  { %v506_v11 = vpop.f32.mrf.mxu1 }
 0x28d   :  { %v507_v23 = vadd.f32 %v506_v11, %v431_v22  ;;  %v870_v24 = vpop.f32.mrf.mxu0  ;;  %v433_v50 = vadd.f32 %v432_v12, %v356_v20 }
 0x28e   :  { %v508_v25 = vpop.f32.mrf.mxu1  ;;  %v871_v33 = vadd.f32 %v870_v24, %v192_v10 }
 0x28f   :  { %v509_v1 = vadd.f32 %v508_v25, %v433_v50  ;;  %v872_v26 = vpop.f32.mrf.mxu0  ;;  %v585_v27 = vadd.f32 %v584_v17, %v507_v23 }
 0x290   :  { %v658_v28 = vpop.f32.mrf.mxu1  ;;  %v873_v38 = vadd.f32 %v872_v26, %v192_v10 }
 0x291   :  { %v659_v29 = vadd.f32 %v658_v28, %v585_v27  ;;  %v587_v30 = vadd.f32 %v586_v21, %v509_v1  ;;  %v1029_v31 = vpop.f32.mrf.mxu0 }
 0x292   :  { %v660_v32 = vpop.f32.mrf.mxu1 }
 0x293   :  { %v663_v34 = vmax.f32 %v659_v29, 0.0  ;;  %v661_v35 = vadd.f32 %v660_v32, %v587_v30  ;;  %v1031_v37 = vpop.f32.mrf.mxu0 }
 0x294   :  { %v952_v36 = vpop.f32.mrf.mxu1 }
 0x295   :  { %v664_v39 = vmax.f32 %v661_v35, 0.0  ;;  %v953_v40 = vadd.f32 %v952_v36, %v871_v33  ;;  %665 = vrot.lane.b32.xlu1 %v663_v34, %s1504_s22  ;;  %v678_v10 = vmul.f32 %v676_v3, %v663_v34 }
 0x296   :  { %v954_v41 = vpop.f32.mrf.mxu1  ;;  %v1183_v45 = vpop.f32.mrf.mxu0 }
 0x297   :  { %v1030_v42 = vadd.f32 %v1029_v31, %v953_v40  ;;  %v955_v43 = vadd.f32 %v954_v41, %v873_v38  ;;  %667 = vrot.lane.b32.xlu0 %v664_v39, %s1504_s22  ;;  %v679_v12 = vmul.f32 %v677_v4, %v664_v39  ;;  %v701_v40 = vld [vmem:[%s1767_s7] sm:$0xff]  ;;  %v702_v41 = vld [vmem:[%s1767_s7 + $0x8] sm:$0xff] }
 0x298   :  { %v1105_v44 = vpop.f32.mrf.mxu1  ;;  %v1185_v52 = vpop.f32.mrf.mxu0 }
 0x299   :  { %v1032_v46 = vadd.f32 %v1031_v37, %v955_v43  ;;  %v1106_v47 = vadd.f32 %v1105_v44, %v1030_v42  ;;  %682 = vrot.lane.b32.xlu1 %v663_v34, %s1503_s8  ;;  %v1344_v44 = vld [vmem:[%s1767_s7 + $0x10] sm:$0xff] }
 0x29a   :  { %v1107_v48 = vpop.f32.mrf.mxu1 }
 0x29b   :  { %v1184_v49 = vadd.f32 %v1183_v45, %v1106_v47  ;;  %v1108_v51 = vadd.f32 %v1107_v48, %v1032_v46  ;;  %684 = vrot.lane.b32.xlu0 %v664_v39, %s1503_s8  ;;  %v1345_v45 = vld [vmem:[%s1767_s7 + $0x18] sm:$0xff] }
 0x29c   :  { %v1257_v53 = vpop.f32.mrf.mxu1 }
 0x29d   :  { %v1186_v54 = vadd.f32 %v1185_v52, %v1108_v51  ;;  %v1258_v55 = vadd.f32 %v1257_v53, %v1184_v49  ;;  %v1346_v51 = vld [vmem:[%s1767_s7 + $0x20] sm:$0xff]  ;;  %v1347_v52 = vld [vmem:[%s1767_s7 + $0x28] sm:$0xff]  ;;  %s1507_s7 = smov [#allocation11]  }
 0x29e   :  { %v1259_v56 = vpop.f32.mrf.mxu1  ;;  %s1330_s14 = sshll.u32 %s1507_s7, 4  ;;  %s1331_s14 = int_to_ptr.vmem [resolvable:$true] %s1330_s14 }
 0x29f   :  { %v1262_v57 = vmax.f32 %v1258_v55, 0.0  ;;  %v1260_v58 = vadd.f32 %v1259_v56, %v1186_v54  ;;  %s1467_s15 = scalar_lea.vmem %s1331_s14, 512  ;;  %p1472_p12 = scmp.lt.s32.totalorder %s1331_s14, %s1331_s14 }
 0x2a0   :  { %p1468_p11 = scmp.ne.s32.totalorder %s1331_s14, %s1467_s15  ;;  %p1473_p13 = scmp.lt.s32.totalorder %s1467_s15, %s1467_s15 }
 0x2a1   :  { %v1263_v59 = vmax.f32 %v1260_v58, 0.0  ;;  %1264 = vrot.lane.b32.xlu1 %v1262_v57, %s1504_s22  ;;  %v1276_v27 = vmul.f32 %v1262_v57, %v676_v3 }
 0x2a2   :  { %p1474_p0 = por %p1473_p13, %p1472_p12 }
 0x2a3   :  { %1266 = vrot.lane.b32.xlu0 %v1263_v59, %s1504_s22  ;;  %v1277_v28 = vmul.f32 %v1263_v59, %v677_v4 }
 0x2a4   :  { %p1475_p1 = pnand %p1474_p0, %p1468_p11 }
 0x2a5   :  { %1280 = vrot.lane.b32.xlu1 %v1262_v57, %s1503_s8 }
 0x2a7   :  { %1282 = vrot.lane.b32.xlu0 %v1263_v59, %s1503_s8 }
 0x2a9   :  { %727 = vperm.xlu1 %1366, %v106_v60  }
 0x307   :  { %v666_v61 = vpop.permute.xlu1 %665 }
 0x309   :  { %v668_v0 = vpop.permute.xlu0 %667 }
 0x30a   :  { %v669_v5 = vsel %vm129_vm0, %v666_v61, %v668_v0  ;;  %v670_v6 = vsel %vm129_vm0, %v668_v0, %v666_v61 }
 0x30b   :  { %v673_v7 = vmul.f32 %v671_v62, %v670_v6  ;;  %v674_v2 = vmul.f32 %v672_v63, %v669_v5  ;;  %v683_v13 = vpop.permute.xlu1 %682 }
 0x30d   :  { %v685_v14 = vpop.permute.xlu0 %684  ;;  %v680_v17 = vadd.f32 %v678_v10, %v673_v7  ;;  %v681_v19 = vadd.f32 %v679_v12, %v674_v2 }
 0x30e   :  { %v686_v15 = vsel %vm147_vm1, %v683_v13, %v685_v14  ;;  %v687_v16 = vsel %vm147_vm1, %v685_v14, %v683_v13 }
 0x30f   :  { %v691_v20 = vmul.f32 %v689_v8, %v686_v15  ;;  %v692_v21 = vmul.f32 %v690_v9, %v687_v16 }
 0x311   :  { %v694_v22 = vadd.f32 %v692_v21, %v681_v19  ;;  %v693_v11 = vadd.f32 %v691_v20, %v680_v17 }
 0x313   :  { %697 = vrot.lane.b32.xlu0 %v694_v22, %s1498_s19  ;;  %v1265_v23 = vpop.permute.xlu1 %1264  ;;  %695 = vrot.lane.b32.xlu1 %v693_v11, %s1498_s19  ;;  %v709_v53 = vmul.f32 %v1345_v45, %v694_v22  ;;  %v708_v54 = vmul.f32 %v1344_v44, %v693_v11 }
 0x315   :  { %v1267_v24 = vpop.permute.xlu0 %1266 }
 0x316   :  { %v1268_v50 = vsel %vm129_vm0, %v1265_v23, %v1267_v24  ;;  %v1269_v25 = vsel %vm129_vm0, %v1267_v24, %v1265_v23 }
 0x317   :  { %v1272_v1 = vmul.f32 %v1269_v25, %v671_v62  ;;  %v1273_v26 = vmul.f32 %v1268_v50, %v672_v63  ;;  %714 = vrot.lane.b32.xlu0 %v694_v22, %s1506_s1  ;;  %712 = vrot.lane.b32.xlu1 %v693_v11, %s1506_s1  ;;  %v1281_v29 = vpop.permute.xlu1 %1280 }
 0x319   :  { %v1283_v30 = vpop.permute.xlu0 %1282  ;;  %v1278_v33 = vadd.f32 %v1276_v27, %v1272_v1  ;;  %v1279_v34 = vadd.f32 %v1277_v28, %v1273_v26 }
 0x31a   :  { %v1284_v31 = vsel %vm147_vm1, %v1281_v29, %v1283_v30  ;;  %v1285_v32 = vsel %vm147_vm1, %v1283_v30, %v1281_v29 }
 0x31b   :  { %v1288_v35 = vmul.f32 %v1284_v31, %v689_v8  ;;  %v1289_v36 = vmul.f32 %v1285_v32, %v690_v9 }
 0x31d   :  { %v1291_v37 = vadd.f32 %v1289_v36, %v1279_v34  ;;  %v1290_v38 = vadd.f32 %v1288_v35, %v1278_v33 }
 0x31f   :  { %1294 = vrot.lane.b32.xlu0 %v1291_v37, %s1498_s19  ;;  %1292 = vrot.lane.b32.xlu1 %v1290_v38, %s1498_s19  ;;  %v1304_v10 = vmul.f32 %v1344_v44, %v1290_v38  ;;  %v1305_v12 = vmul.f32 %v1345_v45, %v1291_v37 }
 0x323   :  { %1308 = vrot.lane.b32.xlu0 %v1290_v38, %s1506_s1  ;;  %1310 = vrot.lane.b32.xlu1 %v1291_v37, %s1506_s1 }
 0x324   :  { %v728_v39 = vpop.permute.xlu1 %727 }
 0x385   :  { %v698_v42 = vpop.permute.xlu0 %697  ;;  %v696_v43 = vpop.permute.xlu1 %695 }
 0x386   :  { %v699_v46 = vsel %vm161_vm3, %v696_v43, %v698_v42  ;;  %v700_v47 = vsel %vm161_vm3, %v698_v42, %v696_v43 }
 0x387   :  { %v703_v48 = vmul.f32 %v701_v40, %v700_v47  ;;  %v704_v49 = vmul.f32 %v702_v41, %v699_v46 }
 0x389   :  { %v715_v55 = vpop.permute.xlu0 %714  ;;  %v713_v56 = vpop.permute.xlu1 %712  ;;  %v710_v59 = vadd.f32 %v708_v54, %v703_v48  ;;  %v711_v60 = vadd.f32 %v709_v53, %v704_v49 }
 0x38a   :  { %v716_v57 = vsel %vm179_vm4, %v713_v56, %v715_v55  ;;  %v717_v58 = vsel %vm179_vm4, %v715_v55, %v713_v56 }
 0x38b   :  { %v721_v61 = vmul.f32 %v1346_v51, %v716_v57  ;;  %v722_v62 = vmul.f32 %v1347_v52, %v717_v58 }
 0x38d   :  { %v723_v63 = vadd.f32 %v721_v61, %v710_v59  ;;  %v724_v0 = vadd.f32 %v722_v62, %v711_v60 }
 0x38f   :  { %v730_v3 = vadd.f32 %v728_v39, %v723_v63  ;;  %v731_v4 = vadd.f32 %v728_v39, %v724_v0 }
 0x391   :  { %732 = vst [vmem:[#allocation11] sm:$0xff] %v730_v3  ;;  %733 = vst [vmem:[#allocation11 + $0x8] sm:$0xff] %v731_v4  ;;  %v1295_v5 = vpop.permute.xlu0 %1294  ;;  %v1293_v6 = vpop.permute.xlu1 %1292 }
 0x392   :  { %v1296_v7 = vsel %vm161_vm3, %v1293_v6, %v1295_v5  ;;  %v1297_v2 = vsel %vm161_vm3, %v1295_v5, %v1293_v6 }
 0x393   :  { %v1300_v8 = vmul.f32 %v1297_v2, %v701_v40  ;;  %v1301_v9 = vmul.f32 %v1296_v7, %v702_v41 }
 0x395   :  { %v1309_v13 = vpop.permute.xlu0 %1308  ;;  %v1311_v14 = vpop.permute.xlu1 %1310  ;;  %v1306_v17 = vadd.f32 %v1304_v10, %v1300_v8  ;;  %v1307_v19 = vadd.f32 %v1305_v12, %v1301_v9 }
 0x396   :  { %v1312_v15 = vsel %vm179_vm4, %v1309_v13, %v1311_v14  ;;  %v1313_v16 = vsel %vm179_vm4, %v1311_v14, %v1309_v13 }
 0x397   :  { %v1316_v20 = vmul.f32 %v1346_v51, %v1312_v15  ;;  %v1317_v21 = vmul.f32 %v1347_v52, %v1313_v16 }
 0x399   :  { %v1318_v22 = vadd.f32 %v1316_v20, %v1306_v17  ;;  %v1319_v11 = vadd.f32 %v1317_v21, %v1307_v19 }
 0x39b   :  { %v1320_v23 = vadd.f32 %v1318_v22, %v728_v39  ;;  %v1321_v24 = vadd.f32 %v1319_v11, %v728_v39 }
 0x39d   :  { %1323 = vst [vmem:[#allocation11 + $0x10] sm:$0xff] %v1320_v23  ;;  %1324 = vst [vmem:[#allocation11 + $0x18] sm:$0xff] %v1321_v24 }
 0x39e   :  { %1478 = shalt.err (!%p1475_p1)
}
 0x39f   :  { %1336 = dma.vmem_to_hbm [thread:$0]  %s1331_s14, 512, %s1770_s10, [#allocation4], %s1497_s18, %s1497_s18, %s1498_s19  }
 0x3a0   :  { %1493 = dma.done.wait [#allocation4], 512  }
 0x3a1   :  { %1494 = vsyncadd [#allocation4], 4294966784 }
 0x3a2   :  { %1340 = vsyncpa [#allocation3], 1 }
 0x3a3   :  { %1341 = vsyncpa [#allocation6], 1 }
 0x3a4   :  { %1342 = vsyncpa [#allocation9], 1 }
 0x3a5   :  { %1343 = vsyncpa [#allocation4], 1 }

</bundles_post_ra>
